<compile_context>
chip_gen: v7x
topology: tpu7x:2x2x1
jax: 0.10.0
libtpu: 0.0.40
codegen_flags: <defaults>
</compile_context>

<pallas_src>
import functools
import math

import jax
import jax.numpy as jnp
from jax import lax
from jax.experimental import pallas as pl
from jax.experimental.pallas import tpu as pltpu


def _gte_loss_kernel(a_ref, p_ref, o_ref, an_ref, pn_ref, acc_ref, *,
                     inv_t, sqrt_inv_t, eps, key_tile, n_rows, inv_n):
    c = pl.program_id(0)

    @pl.when(c == 0)
    def _init():
        # One-time (hoisted out of the key loop): L2-normalize rows, fold
        # sqrt(1/T) into both operands, store bf16 copies for the MXU.
        def _norm_scaled(x):
            sq = jnp.sum(x * x, axis=-1, keepdims=True)
            inv = lax.rsqrt(jnp.maximum(sq, eps * eps)) * sqrt_inv_t
            return (x * inv).astype(jnp.bfloat16)

        an_ref[...] = _norm_scaled(a_ref[...].astype(jnp.float32))
        pn_ref[...] = _norm_scaled(p_ref[...].astype(jnp.float32))
        acc_ref[...] = jnp.zeros_like(acc_ref)

    start = pl.multiple_of(c * key_tile, key_tile)
    aq = an_ref[...]                            # (N, D)  bf16 queries
    pq = pn_ref[...]
    ak = an_ref[pl.ds(start, key_tile), :]      # (KT, D) bf16 keys (free slice)
    pk = pn_ref[pl.ds(start, key_tile), :]

    def _xyt(x, y):                             # x @ y.T, bf16 in / f32 out (MXU)
        return lax.dot_general(x, y, (((1,), (1,)), ((), ())),
                               preferred_element_type=jnp.float32)

    s_ap = _xyt(aq, pk)                         # (N, KT) = cos(a_i, p_key)/T
    s_aa = _xyt(aq, ak)                         # (N, KT) = cos(a_i, a_key)/T
    s_pp = _xyt(pq, pk)                         # (N, KT) = cos(p_i, p_key)/T

    # Shift by the known global max (cos <= 1): exp arguments <= ~0 for any T.
    e_ap = jnp.exp(s_ap - inv_t)

    # Exactly drop the self-similarity terms (the reference subtracts exp(1/T)
    # for them -> catastrophic cancellation; masking to 0 is algebraically
    # identical because cos(x, x) == 1).
    row = lax.broadcasted_iota(jnp.int32, (n_rows, key_tile), 0)
    col = lax.broadcasted_iota(jnp.int32, (n_rows, key_tile), 1) + start
    is_diag = row == col
    e_off = jnp.where(is_diag, 0.0,
                      jnp.exp(s_aa - inv_t) + jnp.exp(s_pp - inv_t))

    # Row-indexed partial partitions from this key tile:
    #   Z'(a_i, P) + [Z'(a_i, A) \ self] + [Z'(P, p_i) \ self]   (Z' = Z*e^{-1/T})
    acc_ref[...] += jnp.sum(e_ap + e_off, axis=1, keepdims=True)        # (N, 1)

    # Column sums of e_ap are Z'(A, p_j) for this tile's keys j (complete:
    # all N query rows are resident).  Scatter them straight onto the matching
    # accumulator rows [start, start+KT) via an O(KT^2) band relayout.
    colsum = jnp.sum(e_ap, axis=0, keepdims=True)                       # (1, KT)
    r_kt = lax.broadcasted_iota(jnp.int32, (key_tile, key_tile), 0)
    c_kt = lax.broadcasted_iota(jnp.int32, (key_tile, key_tile), 1)
    colpart = jnp.sum(jnp.where(r_kt == c_kt, colsum, 0.0),
                      axis=1, keepdims=True)                            # (KT, 1)
    acc_ref[pl.ds(start, key_tile), :] += colpart

    @pl.when(c == pl.num_programs(0) - 1)
    def _finalize():
        # Numerator: cos(a_i, p_i)/T from an exact f32 rowwise dot.  Matches
        # torch's clamp of the *product* of norms at eps.
        a = a_ref[...].astype(jnp.float32)
        p = p_ref[...].astype(jnp.float32)
        dot_ap = jnp.sum(a * p, axis=-1, keepdims=True)
        na2 = jnp.sum(a * a, axis=-1, keepdims=True)
        np2 = jnp.sum(p * p, axis=-1, keepdims=True)
        cos_ii = dot_ap * lax.rsqrt(jnp.maximum(na2 * np2, eps * eps))
        # -log(num / partition) = log(partition * e^{-1/T}) + (1 - cos_ii)/T
        per_i = jnp.log(acc_ref[...]) + (1.0 - cos_ii) * inv_t
        o_ref[...] = jnp.broadcast_to(jnp.sum(per_i) * inv_n, (1, 1))


def _vmem_capacity_bytes():
    try:
        return int(pltpu.get_tpu_info().vmem_capacity_bytes)
    except Exception:  # pragma: no cover - conservative fallback
        return 128 << 20


def _pick_key_tile(n):
    # Largest MXU-friendly tile that evenly divides the batch; cap at 256 on
    # small-VMEM generations (v7x: 64 MiB).  Otherwise run the whole key axis
    # as a single tile (still correct).
    ladder = (512, 256, 128) if _vmem_capacity_bytes() >= (96 << 20) else (256, 128)
    for t in ladder:
        if n % t == 0:
            return t
    return n


def _vmem_limit_bytes(n, d, kt):
    # Rough footprint: f32 residents (assume double-buffered) + bf16 scratch
    # copies + accumulator + a generous allowance for the (N, KT) f32 temps.
    est = (2 * n * d * 4 * 2) + (2 * n * d * 2) + (n * 4) + (8 * n * kt * 4) + (2 << 20)
    if est <= (32 << 20):
        return None            # default scoped limit suffices (demo path)
    cap = _vmem_capacity_bytes()
    return min(int(est * 1.2), cap - (4 << 20))


def gte_loss(anchor_embeddings, positive_embeddings, temperature=0.05):
    n, d = anchor_embeddings.shape
    kt = _pick_key_tile(n)
    inv_t = 1.0 / float(temperature)
    kernel = functools.partial(
        _gte_loss_kernel, inv_t=inv_t, sqrt_inv_t=math.sqrt(inv_t),
        eps=1e-6, key_tile=kt, n_rows=n, inv_n=1.0 / n)

    # Resident queries: constant index map -> fetched from HBM exactly once.
    full_spec = pl.BlockSpec((n, d), lambda c: (0, 0))

    out = pl.pallas_call(
        kernel,
        out_shape=jax.ShapeDtypeStruct((1, 1), jnp.float32),
        grid_spec=pltpu.PrefetchScalarGridSpec(
            num_scalar_prefetch=0,
            grid=(n // kt,),
            in_specs=[full_spec, full_spec],
            out_specs=pl.BlockSpec((1, 1), lambda c: (0, 0)),
            scratch_shapes=[
                pltpu.VMEM((n, d), jnp.bfloat16),   # normalized*sqrt(1/T) anchors
                pltpu.VMEM((n, d), jnp.bfloat16),   # normalized*sqrt(1/T) positives
                pltpu.VMEM((n, 1), jnp.float32),    # partition accumulator
            ]),
        compiler_params=pltpu.CompilerParams(
            dimension_semantics=("arbitrary",),     # key axis is a reduction
            vmem_limit_bytes=_vmem_limit_bytes(n, d, kt)),
    )(anchor_embeddings, positive_embeddings)
    return out[0, 0]


def _gte_loss_ref(a, p, temperature=0.05, eps=1e-6):
    """Pure-JAX mirror of the PyTorch module, written in the numerically
    stable (diagonal-masked, max-shifted) form that is algebraically identical
    because cos(x, x) == 1.  Note: eps clamps each norm here (torch clamps the
    product of norms) — negligible for non-degenerate rows."""
    inv_t = 1.0 / temperature
    hp = lax.Precision.HIGHEST
    an = a / jnp.maximum(jnp.linalg.norm(a, axis=-1, keepdims=True), eps)
    pn = p / jnp.maximum(jnp.linalg.norm(p, axis=-1, keepdims=True), eps)
    s_ap = jnp.dot(an, pn.T, precision=hp)
    s_aa = jnp.dot(an, an.T, precision=hp)
    s_pp = jnp.dot(pn, pn.T, precision=hp)
    n = a.shape[0]
    off = 1.0 - jnp.eye(n, dtype=jnp.float32)
    e_ap = jnp.exp((s_ap - 1.0) * inv_t)
    e_aa = jnp.exp((s_aa - 1.0) * inv_t) * off
    e_pp = jnp.exp((s_pp - 1.0) * inv_t) * off
    partition = (jnp.sum(e_ap, axis=1) + jnp.sum(e_aa, axis=1)
                 + jnp.sum(e_ap, axis=0) + jnp.sum(e_pp, axis=0))
    diag = jnp.sum(an * pn, axis=-1)
    per_i = jnp.log(partition) + (1.0 - diag) * inv_t
    return jnp.mean(per_i)


if __name__ == "__main__":
    N, D = 8, 128  # small embedding batch, lane-dense hidden size
    key = jax.random.PRNGKey(0)
    ka, kp = jax.random.split(key)
    anchor = jax.random.normal(ka, (N, D), dtype=jnp.float32)
    positive = jax.random.normal(kp, (N, D), dtype=jnp.float32)

    loss = gte_loss(anchor, positive, temperature=0.05)
    loss = jax.block_until_ready(loss)

    ref = _gte_loss_ref(anchor, positive, temperature=0.05)
    assert jnp.isfinite(loss), f"loss is not finite: {loss}"
    # Tolerance covers bf16 MXU operands for the partition terms (the
    # numerator diagonal is an exact f32 dot), amplified by 1/T = 20.
    assert jnp.allclose(loss, ref, rtol=5e-2, atol=5e-2), (loss, ref)
    print("KERNEL_OK")
</pallas_src>

<mosaic_0001>
module attributes {stable_mosaic.version = 11 : i64} {
  func.func @_gte_loss_kernel(%arg0: i32, %arg1: memref<8x128xf32, #tpu.memory_space<vmem>>, %arg2: memref<8x128xf32, #tpu.memory_space<vmem>>, %arg3: memref<1x1xf32, #tpu.memory_space<vmem>>, %arg4: memref<8x128xbf16, #tpu.memory_space<vmem>>, %arg5: memref<8x128xbf16, #tpu.memory_space<vmem>>, %arg6: memref<8x1xf32, #tpu.memory_space<vmem>>) attributes {dimension_semantics = [#tpu.dimension_semantics<arbitrary>], iteration_bounds = array<i64: 1>, scalar_prefetch = 0 : i64, scratch_operands = 3 : i64, tpu.core_type = #tpu.core_type<tc>, window_params = [{pipeline_mode = #tpu.pipeline_mode<synchronous>, transform_indices = @transform_0, window_bounds = array<i64: 8, 128>}, {pipeline_mode = #tpu.pipeline_mode<synchronous>, transform_indices = @transform_1, window_bounds = array<i64: 8, 128>}, {pipeline_mode = #tpu.pipeline_mode<synchronous>, transform_indices = @transform_2, window_bounds = array<i64: 1, 1>}]} {
    %c0_i32 = arith.constant 0 : i32
    %0 = arith.cmpi eq, %arg0, %c0_i32 : i32
    %1 = arith.extui %0 : i1 to i32
    %c0_i32_0 = arith.constant 0 : i32
    %2 = arith.cmpi ne, %1, %c0_i32_0 : i32
    scf.if %2 {
      %c0_24 = arith.constant 0 : index
      %c0_25 = arith.constant 0 : index
      %56 = vector.load %arg1[%c0_24, %c0_25] : memref<8x128xf32, #tpu.memory_space<vmem>>, vector<8x128xf32>
      %57 = arith.mulf %56, %56 : vector<8x128xf32>
      %cst_26 = arith.constant dense<0.000000e+00> : vector<8xf32>
      %58 = vector.multi_reduction <add>, %57, %cst_26 [1] : vector<8x128xf32> to vector<8xf32>
      %59 = vector.shape_cast %58 : vector<8xf32> to vector<8x1xf32>
      %cst_27 = arith.constant 9.99999996E-13 : f32
      %60 = vector.broadcast %cst_27 : f32 to vector<8x1xf32>
      %61 = arith.maximumf %59, %60 : vector<8x1xf32>
      %62 = math.rsqrt %61 : vector<8x1xf32>
      %cst_28 = arith.constant 4.47213602 : f32
      %63 = vector.broadcast %cst_28 : f32 to vector<8x1xf32>
      %64 = arith.mulf %62, %63 : vector<8x1xf32>
      %65 = vector.broadcast %64 : vector<8x1xf32> to vector<8x128xf32>
      %66 = arith.mulf %56, %65 : vector<8x128xf32>
      %67 = arith.truncf %66 : vector<8x128xf32> to vector<8x128xbf16>
      %c0_29 = arith.constant 0 : index
      %c0_30 = arith.constant 0 : index
      %68 = vector.load %arg4[%c0_29, %c0_30] : memref<8x128xbf16, #tpu.memory_space<vmem>>, vector<8x128xbf16>
      tpu.vector_store %arg4[%c0_29, %c0_30], %67 {strides = array<i32>} : memref<8x128xbf16, #tpu.memory_space<vmem>>, vector<8x128xbf16>,
      %c0_31 = arith.constant 0 : index
      %c0_32 = arith.constant 0 : index
      %69 = vector.load %arg2[%c0_31, %c0_32] : memref<8x128xf32, #tpu.memory_space<vmem>>, vector<8x128xf32>
      %70 = arith.mulf %69, %69 : vector<8x128xf32>
      %cst_33 = arith.constant dense<0.000000e+00> : vector<8xf32>
      %71 = vector.multi_reduction <add>, %70, %cst_33 [1] : vector<8x128xf32> to vector<8xf32>
      %72 = vector.shape_cast %71 : vector<8xf32> to vector<8x1xf32>
      %cst_34 = arith.constant 9.99999996E-13 : f32
      %73 = vector.broadcast %cst_34 : f32 to vector<8x1xf32>
      %74 = arith.maximumf %72, %73 : vector<8x1xf32>
      %75 = math.rsqrt %74 : vector<8x1xf32>
      %cst_35 = arith.constant 4.47213602 : f32
      %76 = vector.broadcast %cst_35 : f32 to vector<8x1xf32>
      %77 = arith.mulf %75, %76 : vector<8x1xf32>
      %78 = vector.broadcast %77 : vector<8x1xf32> to vector<8x128xf32>
      %79 = arith.mulf %69, %78 : vector<8x128xf32>
      %80 = arith.truncf %79 : vector<8x128xf32> to vector<8x128xbf16>
      %c0_36 = arith.constant 0 : index
      %c0_37 = arith.constant 0 : index
      %81 = vector.load %arg5[%c0_36, %c0_37] : memref<8x128xbf16, #tpu.memory_space<vmem>>, vector<8x128xbf16>
      tpu.vector_store %arg5[%c0_36, %c0_37], %80 {strides = array<i32>} : memref<8x128xbf16, #tpu.memory_space<vmem>>, vector<8x128xbf16>,
      %cst_38 = arith.constant 0.000000e+00 : f32
      %82 = vector.broadcast %cst_38 : f32 to vector<8x1xf32>
      %c0_39 = arith.constant 0 : index
      %c0_40 = arith.constant 0 : index
      %83 = vector.load %arg6[%c0_39, %c0_40] : memref<8x1xf32, #tpu.memory_space<vmem>>, vector<8x1xf32>
      tpu.vector_store %arg6[%c0_39, %c0_40], %82 {strides = array<i32>} : memref<8x1xf32, #tpu.memory_space<vmem>>, vector<8x1xf32>,
    } else {
    }
    %c8_i32 = arith.constant 8 : i32
    %3 = arith.muli %arg0, %c8_i32 : i32
    %4 = tpu.assume_multiple %3, 8 : i32
    %c0 = arith.constant 0 : index
    %c0_1 = arith.constant 0 : index
    %5 = vector.load %arg4[%c0, %c0_1] : memref<8x128xbf16, #tpu.memory_space<vmem>>, vector<8x128xbf16>
    %c0_2 = arith.constant 0 : index
    %c0_3 = arith.constant 0 : index
    %6 = vector.load %arg5[%c0_2, %c0_3] : memref<8x128xbf16, #tpu.memory_space<vmem>>, vector<8x128xbf16>
    %7 = arith.index_cast %4 : i32 to index
    %c0_4 = arith.constant 0 : index
    %8 = vector.load %arg4[%7, %c0_4] : memref<8x128xbf16, #tpu.memory_space<vmem>>, vector<8x128xbf16>
    %9 = arith.index_cast %4 : i32 to index
    %c0_5 = arith.constant 0 : index
    %10 = vector.load %arg5[%9, %c0_5] : memref<8x128xbf16, #tpu.memory_space<vmem>>, vector<8x128xbf16>
    %cst = arith.constant dense<0.000000e+00> : vector<8x8xf32>
    %11 = tpu.matmul %5, %10, %cst {dimension_numbers = #tpu.dot_dimension_numbers<[1], [1], [0], [0], [0, 0, 1, 0], [], []>} : vector<8x128xbf16>, vector<8x128xbf16>, vector<8x8xf32> -> vector<8x8xf32>
    %cst_6 = arith.constant dense<0.000000e+00> : vector<8x8xf32>
    %12 = tpu.matmul %5, %8, %cst_6 {dimension_numbers = #tpu.dot_dimension_numbers<[1], [1], [0], [0], [0, 0, 1, 0], [], []>} : vector<8x128xbf16>, vector<8x128xbf16>, vector<8x8xf32> -> vector<8x8xf32>
    %cst_7 = arith.constant dense<0.000000e+00> : vector<8x8xf32>
    %13 = tpu.matmul %6, %10, %cst_7 {dimension_numbers = #tpu.dot_dimension_numbers<[1], [1], [0], [0], [0, 0, 1, 0], [], []>} : vector<8x128xbf16>, vector<8x128xbf16>, vector<8x8xf32> -> vector<8x8xf32>
    %cst_8 = arith.constant 2.000000e+01 : f32
    %14 = vector.broadcast %cst_8 : f32 to vector<8x8xf32>
    %15 = arith.subf %11, %14 : vector<8x8xf32>
    %16 = math.exp %15 : vector<8x8xf32>
    %17 = tpu.iota {dimensions = array<i32: 0>} : vector<8x8xi32>
    %18 = tpu.iota {dimensions = array<i32: 1>} : vector<8x8xi32>
    %19 = vector.broadcast %4 : i32 to vector<8x8xi32>
    %20 = arith.addi %18, %19 : vector<8x8xi32>
    %21 = arith.cmpi eq, %17, %20 : vector<8x8xi32>
    %cst_9 = arith.constant 2.000000e+01 : f32
    %22 = vector.broadcast %cst_9 : f32 to vector<8x8xf32>
    %23 = arith.subf %12, %22 : vector<8x8xf32>
    %24 = math.exp %23 : vector<8x8xf32>
    %cst_10 = arith.constant 2.000000e+01 : f32
    %25 = vector.broadcast %cst_10 : f32 to vector<8x8xf32>
    %26 = arith.subf %13, %25 : vector<8x8xf32>
    %27 = math.exp %26 : vector<8x8xf32>
    %28 = arith.addf %24, %27 : vector<8x8xf32>
    %cst_11 = arith.constant 0.000000e+00 : f32
    %29 = vector.broadcast %cst_11 : f32 to vector<8x8xf32>
    %30 = arith.select %21, %29, %28 : vector<8x8xi1>, vector<8x8xf32>
    %c0_12 = arith.constant 0 : index
    %c0_13 = arith.constant 0 : index
    %31 = vector.load %arg6[%c0_12, %c0_13] : memref<8x1xf32, #tpu.memory_space<vmem>>, vector<8x1xf32>
    %32 = arith.addf %16, %30 : vector<8x8xf32>
    %cst_14 = arith.constant dense<0.000000e+00> : vector<8xf32>
    %33 = vector.multi_reduction <add>, %32, %cst_14 [1] : vector<8x8xf32> to vector<8xf32>
    %34 = vector.shape_cast %33 : vector<8xf32> to vector<8x1xf32>
    %35 = arith.addf %31, %34 : vector<8x1xf32>
    %c0_15 = arith.constant 0 : index
    %c0_16 = arith.constant 0 : index
    %36 = vector.load %arg6[%c0_15, %c0_16] : memref<8x1xf32, #tpu.memory_space<vmem>>, vector<8x1xf32>
    tpu.vector_store %arg6[%c0_15, %c0_16], %35 {strides = array<i32>} : memref<8x1xf32, #tpu.memory_space<vmem>>, vector<8x1xf32>,
    %cst_17 = arith.constant dense<0.000000e+00> : vector<8xf32>
    %37 = vector.multi_reduction <add>, %16, %cst_17 [0] : vector<8x8xf32> to vector<8xf32>
    %38 = vector.shape_cast %37 : vector<8xf32> to vector<1x8xf32>
    %39 = tpu.iota {dimensions = array<i32: 0>} : vector<8x8xi32>
    %40 = tpu.iota {dimensions = array<i32: 1>} : vector<8x8xi32>
    %41 = arith.cmpi eq, %39, %40 : vector<8x8xi32>
    %cst_18 = arith.constant 0.000000e+00 : f32
    %42 = vector.shape_cast %38 : vector<1x8xf32> to vector<1x8xf32>
    %43 = vector.broadcast %42 : vector<1x8xf32> to vector<8x8xf32>
    %44 = vector.broadcast %cst_18 : f32 to vector<8x8xf32>
    %45 = arith.select %41, %43, %44 : vector<8x8xi1>, vector<8x8xf32>
    %cst_19 = arith.constant dense<0.000000e+00> : vector<8xf32>
    %46 = vector.multi_reduction <add>, %45, %cst_19 [1] : vector<8x8xf32> to vector<8xf32>
    %47 = vector.shape_cast %46 : vector<8xf32> to vector<8x1xf32>
    %48 = arith.index_cast %4 : i32 to index
    %c0_20 = arith.constant 0 : index
    %49 = vector.load %arg6[%48, %c0_20] : memref<8x1xf32, #tpu.memory_space<vmem>>, vector<8x1xf32>
    %50 = arith.addf %49, %47 : vector<8x1xf32>
    %51 = arith.index_cast %4 : i32 to index
    %c0_21 = arith.constant 0 : index
    %52 = vector.load %arg6[%51, %c0_21] : memref<8x1xf32, #tpu.memory_space<vmem>>, vector<8x1xf32>
    tpu.vector_store %arg6[%51, %c0_21], %50 {strides = array<i32>} : memref<8x1xf32, #tpu.memory_space<vmem>>, vector<8x1xf32>,
    %c0_i32_22 = arith.constant 0 : i32
    %53 = arith.cmpi eq, %arg0, %c0_i32_22 : i32
    %54 = arith.extui %53 : i1 to i32
    %c0_i32_23 = arith.constant 0 : i32
    %55 = arith.cmpi ne, %54, %c0_i32_23 : i32
    scf.if %55 {
      %c0_24 = arith.constant 0 : index
      %c0_25 = arith.constant 0 : index
      %56 = vector.load %arg1[%c0_24, %c0_25] : memref<8x128xf32, #tpu.memory_space<vmem>>, vector<8x128xf32>
      %c0_26 = arith.constant 0 : index
      %c0_27 = arith.constant 0 : index
      %57 = vector.load %arg2[%c0_26, %c0_27] : memref<8x128xf32, #tpu.memory_space<vmem>>, vector<8x128xf32>
      %58 = arith.mulf %56, %57 : vector<8x128xf32>
      %cst_28 = arith.constant dense<0.000000e+00> : vector<8xf32>
      %59 = vector.multi_reduction <add>, %58, %cst_28 [1] : vector<8x128xf32> to vector<8xf32>
      %60 = vector.shape_cast %59 : vector<8xf32> to vector<8x1xf32>
      %61 = arith.mulf %56, %56 : vector<8x128xf32>
      %cst_29 = arith.constant dense<0.000000e+00> : vector<8xf32>
      %62 = vector.multi_reduction <add>, %61, %cst_29 [1] : vector<8x128xf32> to vector<8xf32>
      %63 = vector.shape_cast %62 : vector<8xf32> to vector<8x1xf32>
      %64 = arith.mulf %57, %57 : vector<8x128xf32>
      %cst_30 = arith.constant dense<0.000000e+00> : vector<8xf32>
      %65 = vector.multi_reduction <add>, %64, %cst_30 [1] : vector<8x128xf32> to vector<8xf32>
      %66 = vector.shape_cast %65 : vector<8xf32> to vector<8x1xf32>
      %67 = arith.mulf %63, %66 : vector<8x1xf32>
      %cst_31 = arith.constant 9.99999996E-13 : f32
      %68 = vector.broadcast %cst_31 : f32 to vector<8x1xf32>
      %69 = arith.maximumf %67, %68 : vector<8x1xf32>
      %70 = math.rsqrt %69 : vector<8x1xf32>
      %71 = arith.mulf %60, %70 : vector<8x1xf32>
      %c0_32 = arith.constant 0 : index
      %c0_33 = arith.constant 0 : index
      %72 = vector.load %arg6[%c0_32, %c0_33] : memref<8x1xf32, #tpu.memory_space<vmem>>, vector<8x1xf32>
      %73 = math.log %72 : vector<8x1xf32>
      %cst_34 = arith.constant 1.000000e+00 : f32
      %74 = vector.broadcast %cst_34 : f32 to vector<8x1xf32>
      %75 = arith.subf %74, %71 : vector<8x1xf32>
      %cst_35 = arith.constant 2.000000e+01 : f32
      %76 = vector.broadcast %cst_35 : f32 to vector<8x1xf32>
      %77 = arith.mulf %75, %76 : vector<8x1xf32>
      %78 = arith.addf %73, %77 : vector<8x1xf32>
      %79 = vector.shape_cast %78 : vector<8x1xf32> to vector<1x8x1xf32>
      %cst_36 = arith.constant dense<0.000000e+00> : vector<1xf32>
      %80 = vector.multi_reduction <add>, %79, %cst_36 [1, 2] : vector<1x8x1xf32> to vector<1xf32>
      %81 = vector.shape_cast %80 : vector<1xf32> to vector<1x1x1xf32>
      %82 = vector.extract %81[0, 0, 0] : f32 from vector<1x1x1xf32>
      %cst_37 = arith.constant 1.250000e-01 : f32
      %83 = arith.mulf %82, %cst_37 : f32
      %84 = vector.broadcast %83 : f32 to vector<1x1xf32>
      %c0_38 = arith.constant 0 : index
      %c0_39 = arith.constant 0 : index
      %85 = vector.load %arg3[%c0_38, %c0_39] : memref<1x1xf32, #tpu.memory_space<vmem>>, vector<1x1xf32>
      tpu.vector_store %arg3[%c0_38, %c0_39], %84 {strides = array<i32>} : memref<1x1xf32, #tpu.memory_space<vmem>>, vector<1x1xf32>,
    } else {
    }
    return
  }
  func.func @transform_0(%arg0: i32) -> (i32, i32) {
    %c0_i32 = arith.constant 0 : i32
    %c0_i32_0 = arith.constant 0 : i32
    %c0_i32_1 = arith.constant 0 : i32
    return %c0_i32, %c0_i32_0 : i32, i32
  }
  func.func @transform_1(%arg0: i32) -> (i32, i32) {
    %c0_i32 = arith.constant 0 : i32
    %c0_i32_0 = arith.constant 0 : i32
    %c0_i32_1 = arith.constant 0 : i32
    return %c0_i32, %c0_i32_0 : i32, i32
  }
  func.func @transform_2(%arg0: i32) -> (i32, i32) {
    %c0_i32 = arith.constant 0 : i32
    %c0_i32_0 = arith.constant 0 : i32
    %c0_i32_1 = arith.constant 0 : i32
    return %c0_i32, %c0_i32_0 : i32, i32
  }
}

</mosaic_0001>

<bundles_post_ra>
// kernel: tpu_custom_call.1
= control target key start
LH: loop header
LB: loop body
LE: loop exit
PB: predicated region body
PF: predicated region fallthrough
CT: control target
= control target key end

     0   :  { %7 = vsyncpa [#allocation6], 0  ;;  %s485_s0 = inlined_call_operand.hbm [shape: f32[8,128], index: 0, kind: input, shape index: {}]   ;;  %s486_s1 = inlined_call_operand.hbm [shape: f32[8,128], index: 1, kind: input, shape index: {}]   ;;  %s487_s2 = inlined_call_operand.hbm [shape: f32[1,1], index: 2, kind: output, shape index: {}]  }
   0x1   :  { %8 = vsyncpa [#allocation9], 0 }
   0x2   :  { %9 = vsyncpa [#allocation7], 0  ;;  %s415_s9 = smov [#allocation5]   ;;  %s416_s11 = smov [#allocation8]  }
   0x3   :  { %s16_s10 = sshll.u32 %s415_s9, 4  ;;  %s26_s12 = sshll.u32 %s416_s11, 4  ;;  %s17_s10 = int_to_ptr.vmem [resolvable:$true] %s16_s10  ;;  %s27_s12 = int_to_ptr.vmem [resolvable:$true] %s26_s12 }
   0x4   :  { %s343_s15 = scalar_lea.hbm %s485_s0, 128 }
   0x5   :  { %p344_p0 = scmp.ne.s32.totalorder %s485_s0, %s343_s15  ;;  %p347_p1 = scmp.lt.u32.totalorder %s343_s15, %s485_s0 }
   0x7   :  { %p349_p2 = pnand %p347_p1, %p344_p0 }
   0x9   :  { %352 = shalt.err (!%p349_p2)
}
   0xa   :  { %s353_s20 = scalar_lea.vmem %s17_s10, 128  ;;  %p358_p4 = scmp.lt.s32.totalorder %s17_s10, %s17_s10 }
   0xb   :  { %p354_p3 = scmp.ne.s32.totalorder %s17_s10, %s353_s20  ;;  %p359_p5 = scmp.lt.s32.totalorder %s353_s20, %s353_s20 }
   0xd   :  { %p360_p6 = por %p359_p5, %p358_p4 }
   0xf   :  { %p361_p7 = pnand %p360_p6, %p354_p3 }
  0x11   :  { %364 = shalt.err (!%p361_p7)
}
  0x12   :  { %19 = dma.hbm_to_vmem [thread:$0]  %s485_s0, 128, %s17_s10, [#allocation6]  }
  0x13   :  { %s365_s25 = scalar_lea.hbm %s486_s1, 128 }
  0x14   :  { %p366_p8 = scmp.ne.s32.totalorder %s486_s1, %s365_s25  ;;  %p369_p9 = scmp.lt.u32.totalorder %s365_s25, %s486_s1 }
  0x16   :  { %p371_p10 = pnand %p369_p9, %p366_p8 }
  0x18   :  { %374 = shalt.err (!%p371_p10)
}
  0x19   :  { %s375_s30 = scalar_lea.vmem %s27_s12, 128  ;;  %p380_p12 = scmp.lt.s32.totalorder %s27_s12, %s27_s12 }
  0x1a   :  { %p376_p11 = scmp.ne.s32.totalorder %s27_s12, %s375_s30  ;;  %p381_p13 = scmp.lt.s32.totalorder %s375_s30, %s375_s30 }
  0x1c   :  { %p382_p0 = por %p381_p13, %p380_p12 }
  0x1e   :  { %p383_p1 = pnand %p382_p0, %p376_p11 }
  0x20   :  { %386 = shalt.err (!%p383_p1)
}
  0x21   :  { %29 = dma.hbm_to_vmem [thread:$0]  %s486_s1, 128, %s27_s12, [#allocation9]  }
  0x22   :  { %409 = dma.done.wait [#allocation6], 128  }
  0x23   :  { %410 = vsyncadd [#allocation6], 4294967168 }
  0x24   :  { %411 = dma.done.wait [#allocation9], 128  }
  0x25   :  { %412 = vsyncadd [#allocation9], 4294967168  ;;  %v51_v0 = vld [vmem:[#allocation8] sm:$0xff]  ;;  %v41_v1 = vld [vmem:[#allocation5] sm:$0xff]  ;;  %v417_v4 = vmov 0.0   ;;  %vm418_vm0 = vmmov 0   ;;  %v197_v41 = vlaneseq }
  0x26   :  { %v459_v2 = vmul.f32 %v51_v0, %v51_v0  ;;  %v42_v3 = vmul.f32 %v41_v1, %v41_v1  ;;  %304 = vmatprep.subr.bf16.mxu0 %v417_v4  ;;  %310 = vmatprep.subr.bf16.mxu1 %v417_v4  ;;  %v242_v21 = vmul.f32 %v51_v0, %v41_v1  ;;  %vm61_vm1 = vcmask 7168   ;;  %s419_s1 = smov [#allocation10]  }
  0x27   :  { %306 = vmatprep.mubr.msk.bf16.mxu0 %vm418_vm0, %v417_v4  ;;  %312 = vmatprep.mubr.msk.bf16.mxu1 %vm418_vm0, %v417_v4  ;;  %62 = vst.msk [vmem:[#allocation4] sm:$0xff] %vm61_vm1, %v417_v4  ;;  %vm214_vm2 = vcmask 64512   ;;  %v198_v44 = vshrl.u32 %v197_v41, 7  ;;  %v200_v45 = vand.u32 127, %v197_v41  ;;  %s281_s4 = sshll.u32 %s419_s1, 4  ;;  %vm273_vm4 = vcmask 0   ;;  %s282_s4 = int_to_ptr.vmem [resolvable:$true] %s281_s4 }
  0x28   :  { %53 = vadd.xlane.f32.xlu0 %v459_v2  ;;  %s387_s7 = scalar_lea.vmem %s282_s4, 16  ;;  %s391_s8 = scalar_lea.vmem %s282_s4, 32 }
  0x29   :  { %vm203_vm3 = vcmp.eq.s32.totalorder %v198_v44, %v200_v45  ;;  %p388_p2 = scmp.ne.s32.totalorder %s282_s4, %s387_s7  ;;  %p392_p3 = scmp.lt.s32.totalorder %s282_s4, %s282_s4 }
  0x2a   :  { %p393_p4 = scmp.lt.s32.totalorder %s391_s8, %s387_s7 }
  0x2c   :  { %43 = vadd.xlane.f32.xlu0 %v42_v3  ;;  %p394_p5 = por %p393_p4, %p392_p3 }
  0x2e   :  { %v212_v59 = vld [vmem:[#allocation4] sm:$0xff]  ;;  %p395_p6 = pnand %p394_p5, %p388_p2 }
  0x30   :  { %246 = vadd.xlane.f32.xlu0 %v42_v3 }
  0x34   :  { %243 = vadd.xlane.f32.xlu0 %v242_v21 }
  0xb5   :  { %v54_v5 = vpop.xlane.xlu0 %53 }
  0xb6   :  { %v55_v6 = vmax.f32 %v54_v5, 1e-12 }
  0xb8   :  { %329 = vrsqrt.f32 %v55_v6 }
  0xb9   :  { %v44_v7 = vpop.xlane.xlu0 %43 }
  0xba   :  { %v45_v8 = vmax.f32 %v44_v7, 1e-12 }
  0xbc   :  { %331 = vrsqrt.f32 %v45_v8 }
  0xbd   :  { %v247_v63 = vpop.xlane.xlu0 %246 }
  0xc1   :  { %v244_v7 = vpop.xlane.xlu0 %243 }
  0xc2   :  { %v330_v9 = vpop.eup %329 }
  0xc3   :  { %v57_v10 = vmul.f32 4.472136, %v330_v9 }
  0xc5   :  { %v58_v11 = vmul.f32 %v57_v10, %v51_v0 }
  0xc6   :  { %v332_v12 = vpop.eup %331 }
  0xc7   :  { %v59_v13 = vpack.c.bf16 %v58_v11, %v58_v11  ;;  %v47_v14 = vmul.f32 4.472136, %v332_v12 }
  0xc9   :  { %60 = vst [vmem:[#allocation3] sm:$0xf] %v59_v13  ;;  %v48_v15 = vmul.f32 %v47_v14, %v41_v1 }
  0xcb   :  { %v49_v16 = vpack.c.bf16 %v48_v15, %v48_v15 }
  0xcd   :  { %50 = vst [vmem:[#allocation2] sm:$0xf] %v49_v16 }
  0xd0   :  { %v73_v17 = vld [vmem:[#allocation3] sm:$0xf] }
  0xd1   :  { %305 = vmatpush3.bf16.xpose.msra.mxu0 %v73_v17  ;;  %v65_v20 = vld [vmem:[#allocation3] sm:$0xf] }
  0xd2   :  { %316 = vmatprep.subr.bf16.mxu0 %v417_v4 }
  0xd4   :  { %v70_v18 = vld [vmem:[#allocation2] sm:$0xf] }
  0xd5   :  { %311 = vmatpush3.bf16.xpose.msra.mxu1 %v70_v18  ;;  %v64_v19 = vld [vmem:[#allocation2] sm:$0xf] }
  0xd8   :  { %307 = vmatmul.mubr.bf16.vlgmr.msra.gmra.mrb[0].mxu0 %v64_v19 }
  0xd9   :  { %317 = vmatpush3.bf16.xpose.msra.mxu0 %v73_v17  ;;  %318 = vmatprep.mubr.msk.bf16.mxu0 %vm418_vm0, %v417_v4 }
  0xdc   :  { %313 = vmatmul.mubr.bf16.vlgmr.msra.gmra.mrb[0].mxu1 %v64_v19 }
  0xe0   :  { %319 = vmatmul.mubr.bf16.vlgmr.msra.gmra.mrb[4].mxu0 %v65_v20 }
 0x1ab   :  { %v108_v22 = vpop.f32.mrb[0].mxu0 }
 0x1ac   :  { %v295_v23 = vadd.f32 -20.0, %v108_v22  ;;  %v308_v24 = vpop.f32.mrb[1].mxu0 }
 0x1ad   :  { %v111_v25 = vpop.f32.mrb[2].mxu0 }
 0x1ae   :  { %v195_v26 = vmul.f32 1.442695, %v295_v23  ;;  %v309_v27 = vpop.f32.mrb[3].mxu0 }
 0x1af   :  { %v148_v28 = vpop.f32.mrb[0].mxu1 }
 0x1b0   :  { %333 = vpow2.f32 %v195_v26  ;;  %v296_v29 = vadd.f32 -20.0, %v148_v28  ;;  %v314_v30 = vpop.f32.mrb[1].mxu1 }
 0x1b1   :  { %v151_v31 = vpop.f32.mrb[2].mxu1 }
 0x1b2   :  { %v315_v32 = vpop.f32.mrb[3].mxu1  ;;  %v205_v33 = vmul.f32 1.442695, %v296_v29 }
 0x1b3   :  { %v188_v34 = vpop.f32.mrb[4].mxu0 }
 0x1b4   :  { %v297_v35 = vadd.f32 -20.0, %v188_v34  ;;  %v320_v36 = vpop.f32.mrb[5].mxu0  ;;  %335 = vpow2.f32 %v205_v33 }
 0x1b5   :  { %v191_v37 = vpop.f32.mrb[6].mxu0 }
 0x1b6   :  { %v208_v38 = vmul.f32 1.442695, %v297_v35  ;;  %v321_v39 = vpop.f32.mrb[7].mxu0 }
 0x1b8   :  { %337 = vpow2.f32 %v208_v38 }
 0x1ba   :  { %v334_v40 = vpop.eup %333 }
 0x1bb   :  { %v221_v42 = vsel %vm214_vm2, %v334_v40, 0.0 }
 0x1bc   :  { %v222_v43 = vrot.slane %v221_v42, 4 }
 0x1be   :  { %v223_v46 = vadd.f32 %v222_v43, %v221_v42  ;;  %v336_v48 = vpop.eup %335 }
 0x1c0   :  { %v224_v47 = vrot.slane %v223_v46, 2 }
 0x1c2   :  { %v338_v49 = vpop.eup %337  ;;  %v225_v50 = vadd.f32 %v224_v47, %v223_v46 }
 0x1c3   :  { %v210_v51 = vadd.f32 %v338_v49, %v336_v48 }
 0x1c4   :  { %v226_v52 = vrot.slane %v225_v50, 1 }
 0x1c5   :  { %v211_v53 = vsel %vm203_vm3, 0.0, %v210_v51 }
 0x1c6   :  { %v213_v54 = vadd.f32 %v334_v40, %v211_v53  ;;  %v227_v55 = vadd.f32 %v226_v52, %v225_v50 }
 0x1c8   :  { %v215_v56 = vsel %vm214_vm2, %v213_v54, 0.0  ;;  %v229_v57 = vsel %vm203_vm3, %v227_v55, 0.0 }
 0x1c9   :  { %216 = vadd.xlane.f32.xlu1 %v215_v56  ;;  %v230_v58 = vsel %vm214_vm2, %v229_v57, 0.0 }
 0x1cd   :  { %231 = vadd.xlane.f32.xlu1 %v230_v58 }
 0x1d1   :  { %249 = vadd.xlane.f32.xlu1 %v459_v2 }
 0x256   :  { %v217_v60 = vpop.xlane.xlu1 %216 }
 0x257   :  { %v218_v61 = vadd.f32 %v217_v60, %v212_v59 }
 0x259   :  { %220 = vst.msk [vmem:[#allocation4] sm:$0xff] %vm61_vm1, %v218_v61 }
 0x25a   :  { %v232_v62 = vpop.xlane.xlu1 %231 }
 0x25e   :  { %v250_v0 = vpop.xlane.xlu1 %249 }
 0x25f   :  { %v251_v1 = vmul.f32 %v250_v0, %v247_v63 }
 0x260   :  { %v234_v3 = vld [vmem:[#allocation4] sm:$0xff] }
 0x261   :  { %v235_v4 = vadd.f32 %v234_v3, %v232_v62  ;;  %v252_v5 = vmax.f32 %v251_v1, 1e-12 }
 0x263   :  { %236 = vst.msk [vmem:[#allocation4] sm:$0xff] %vm61_vm1, %v235_v4  ;;  %339 = vrsqrt.f32 %v252_v5 }
 0x26a   :  { %v255_v6 = vld [vmem:[#allocation4] sm:$0xff] }
 0x26b   :  { %341 = vlog2.f32 %v255_v6 }
 0x26d   :  { %v340_v8 = vpop.eup %339 }
 0x26e   :  { %v254_v2 = vmul.f32 %v340_v8, %v244_v7 }
 0x270   :  { %v258_v9 = vsub.f32 1.0, %v254_v2 }
 0x272   :  { %v259_v10 = vmul.f32 20.0, %v258_v9 }
 0x275   :  { %v342_v11 = vpop.eup %341 }
 0x276   :  { %v257_v12 = vmul.f32 0.6931472, %v342_v11 }
 0x278   :  { %v260_v13 = vadd.f32 %v259_v10, %v257_v12 }
 0x27a   :  { %v261_v14 = vsel %vm61_vm1, %v260_v13, 0.0 }
 0x27b   :  { %262 = vadd.xlane.f32.xlu1 %v261_v14 }
 0x308   :  { %v263_v15 = vpop.xlane.xlu1 %262 }
 0x309   :  { %v264_v16 = vrot.slane %v263_v15, 4 }
 0x30b   :  { %v265_v17 = vadd.f32 %v264_v16, %v263_v15 }
 0x30d   :  { %v266_v18 = vrot.slane %v265_v17, 2 }
 0x30f   :  { %v267_v19 = vadd.f32 %v266_v18, %v265_v17 }
 0x311   :  { %v268_v20 = vrot.slane %v267_v19, 1 }
 0x313   :  { %v269_v21 = vadd.f32 %v268_v20, %v267_v19 }
 0x315   :  { %322 = vpush %v269_v21 }
 0x346   :  { %s323_s5 = spop %322 }
 0x347   :  { %s271_s6 = smul.f32 0.125, %s323_s5 }
 0x349   :  { %v272_v22 = vstv %s271_s6 }
 0x34a   :  { %274 = vst.msk [vmem:[#allocation10] sm:$0x1] %vm273_vm4, %v272_v22 }
 0x34b   :  { %398 = shalt.err (!%p395_p6)
}
 0x34c   :  { %s399_s11 = scalar_lea.hbm %s487_s2, 16 }
 0x34d   :  { %p400_p7 = scmp.ne.s32.totalorder %s487_s2, %s399_s11  ;;  %p403_p8 = scmp.lt.u32.totalorder %s399_s11, %s487_s2 }
 0x34f   :  { %p405_p9 = pnand %p403_p8, %p400_p7 }
 0x351   :  { %408 = shalt.err (!%p405_p9)
}
 0x352   :  { %284 = dma.vmem_to_hbm [thread:$0]  %s282_s4, 16, %s487_s2, [#allocation7]  }
 0x353   :  { %413 = dma.done.wait [#allocation7], 16  }
 0x354   :  { %414 = vsyncadd [#allocation7], 4294967280 }
 0x355   :  { %288 = vsyncpa [#allocation6], 1 }
 0x356   :  { %289 = vsyncpa [#allocation9], 1 }
 0x357   :  { %290 = vsyncpa [#allocation7], 1 }

</bundles_post_ra>
